<compile_context>
chip_gen: v7x
topology: tpu7x:2x2x1
jax: 0.10.0
libtpu: 0.0.40
codegen_flags: <defaults>
</compile_context>

<pallas_src>
import functools

import jax
import jax.numpy as jnp
from jax.experimental import pallas as pl
from jax.experimental.pallas import tpu as pltpu

LANES = 128
NUM_CORES = 2                                    # leading "parallel" grid axis
VMEM_BYTES_PER_INPUT_BUFFER = 4 * 1024 * 1024    # ~4 MiB / input / pipeline buf
VMEM_LIMIT_BYTES = 32 * 1024 * 1024              # 24 MiB of tiles + headroom


def _round_up(x, n):
    return -(-x // n) * n


def _cda_loss_kernel(img1_ref, img2_ref, f_ref, out_ref, acc_ref, *,
                     n_rows, tile_rows, steps_per_core, need_mask):
    i = pl.program_id(1)                         # sequential axis within a core

    @pl.when(i == 0)
    def _init():
        acc_ref[...] = jnp.zeros_like(acc_ref)

    # Stream in native dtype, cast to f32 on the VPU.
    f = f_ref[...].astype(jnp.float32)
    d1 = f - img1_ref[...].astype(jnp.float32)
    d2 = f - img2_ref[...].astype(jnp.float32)
    sq = d1 * d1 + d2 * d2                       # fused (f-a)^2 + (f-b)^2

    if need_mask:
        c = pl.program_id(0)
        block_row = c * steps_per_core + i       # logical (un-clamped) tile id
        overhangs = (block_row + 1) * tile_rows > n_rows

        @pl.when(overhangs)
        def _masked():
            # Only the globally-last / padding tile pays for the mask.
            row_ids = jax.lax.broadcasted_iota(jnp.int32, (tile_rows, 1), 0)
            valid = (block_row * tile_rows + row_ids) < n_rows
            # Keep the select (NOT multiply-by-mask): overhung rows may hold
            # garbage that squares to inf/NaN; jnp.where discards it safely.
            acc_ref[...] += jnp.sum(jnp.where(valid, sq, jnp.float32(0.0)),
                                    axis=0, keepdims=True)

        @pl.when(jnp.logical_not(overhangs))
        def _unmasked():
            acc_ref[...] += jnp.sum(sq, axis=0, keepdims=True)
    else:
        acc_ref[...] += jnp.sum(sq, axis=0, keepdims=True)

    @pl.when(i == pl.num_programs(1) - 1)
    def _finalize():
        out_ref[...] = acc_ref[...]              # per-core (1, 128) partial sum


def cda_loss(img1, img2, f_img):
    assert img1.shape == img2.shape == f_img.shape
    n_elements = int(img1.size)

    def _flatten(x):
        x = x.reshape(-1)
        pad = (-x.shape[0]) % LANES
        if pad:
            # TODO(synk): lane-ragged sizes fall back to a zero pad (one extra
            # HBM read+write pass per tensor); a 1-D-block kernel variant would
            # avoid the copy. Zero padding is numerically neutral (identical
            # zeros in all three tensors; n_elements stays the true count).
            # Lane-aligned sizes (the common case) pay nothing here.
            x = jnp.pad(x, (0, pad))
        return x.reshape(-1, LANES)

    a, b, c = _flatten(img1), _flatten(img2), _flatten(f_img)
    m = a.shape[0]

    # Dtype-aware tile sizing by byte budget (rows are multiples of 8).
    itemsize = max(jnp.dtype(t.dtype).itemsize for t in (a, b, c))
    budget_rows = max(8, VMEM_BYTES_PER_INPUT_BUFFER // (LANES * itemsize))

    if m <= 8:
        tile_rows = m                            # single tiny block (full rows)
        steps_per_core = 1
    else:
        rows_per_core = pl.cdiv(m, NUM_CORES)
        steps_per_core = pl.cdiv(rows_per_core, budget_rows)
        tile_rows = _round_up(pl.cdiv(rows_per_core, steps_per_core), 8)

    n_valid_tiles = pl.cdiv(m, tile_rows)
    covered_rows = NUM_CORES * steps_per_core * tile_rows
    need_mask = covered_rows != m                # ragged last tile / padding tile

    # Clamp the data index so a core's padding tile (odd tile count or tiny m)
    # re-reads the last valid tile instead of running off the array; the mask
    # uses the logical tile id, so the duplicate contributes exactly zero.
    last_tile = n_valid_tiles - 1

    def tile_index(ci, si):
        return (jnp.minimum(ci * steps_per_core + si, last_tile), 0)

    tile_spec = pl.BlockSpec((tile_rows, LANES), tile_index)

    kernel = functools.partial(
        _cda_loss_kernel,
        n_rows=m,
        tile_rows=tile_rows,
        steps_per_core=steps_per_core,
        need_mask=need_mask,
    )

    partials = pl.pallas_call(
        kernel,
        out_shape=jax.ShapeDtypeStruct((1, NUM_CORES * LANES), jnp.float32),
        grid_spec=pltpu.PrefetchScalarGridSpec(
            num_scalar_prefetch=0,
            grid=(NUM_CORES, steps_per_core),
            in_specs=[tile_spec, tile_spec, tile_spec],
            out_specs=pl.BlockSpec((1, LANES), lambda ci, si: (0, ci)),
            scratch_shapes=[pltpu.VMEM((1, LANES), jnp.float32)],
        ),
        compiler_params=pltpu.CompilerParams(
            dimension_semantics=("parallel", "arbitrary"),
            vmem_limit_bytes=VMEM_LIMIT_BYTES,
        ),
    )(a, b, c)

    # Each MSE is a mean over n_elements; loss = mse1 + mse2.
    return jnp.sum(partials) / jnp.float32(n_elements)


if __name__ == "__main__":
    key = jax.random.PRNGKey(0)
    k1, k2, k3 = jax.random.split(key, 3)
    # NCHW, matching the PyTorch module's expected image tensors.
    shape = (2, 4, 16, 16)
    img1 = jax.random.normal(k1, shape, dtype=jnp.float32)
    img2 = jax.random.normal(k2, shape, dtype=jnp.float32)
    f_img = jax.random.normal(k3, shape, dtype=jnp.float32)

    loss = cda_loss(img1, img2, f_img)
    jax.block_until_ready(loss)

    # Reference check (plain JAX).
    ref = jnp.mean((f_img - img1) ** 2) + jnp.mean((f_img - img2) ** 2)
    assert jnp.allclose(loss, ref, rtol=1e-5, atol=1e-5), (loss, ref)

    print("KERNEL_OK")
</pallas_src>

<mosaic_0001>
module attributes {stable_mosaic.version = 11 : i64} {
  func.func @_cda_loss_kernel(%arg0: i32, %arg1: i32, %arg2: memref<8x128xf32, #tpu.memory_space<vmem>>, %arg3: memref<8x128xf32, #tpu.memory_space<vmem>>, %arg4: memref<8x128xf32, #tpu.memory_space<vmem>>, %arg5: memref<1x128xf32, #tpu.memory_space<vmem>>, %arg6: memref<1x128xf32, #tpu.memory_space<vmem>>) attributes {dimension_semantics = [#tpu.dimension_semantics<parallel>, #tpu.dimension_semantics<arbitrary>], iteration_bounds = array<i64: 2, 1>, scalar_prefetch = 0 : i64, scratch_operands = 1 : i64, tpu.core_type = #tpu.core_type<tc>, window_params = [{transform_indices = @transform_0, window_bounds = array<i64: 8, 128>}, {transform_indices = @transform_1, window_bounds = array<i64: 8, 128>}, {transform_indices = @transform_2, window_bounds = array<i64: 8, 128>}, {transform_indices = @transform_3, window_bounds = array<i64: 1, 128>}]} {
    %c0_i32 = arith.constant 0 : i32
    %0 = arith.cmpi eq, %arg1, %c0_i32 : i32
    %1 = arith.extui %0 : i1 to i32
    %c0_i32_0 = arith.constant 0 : i32
    %2 = arith.cmpi ne, %1, %c0_i32_0 : i32
    scf.if %2 {
      %cst_12 = arith.constant 0.000000e+00 : f32
      %19 = vector.broadcast %cst_12 : f32 to vector<1x128xf32>
      %c0_13 = arith.constant 0 : index
      %c0_14 = arith.constant 0 : index
      %20 = vector.load %arg6[%c0_13, %c0_14] : memref<1x128xf32, #tpu.memory_space<vmem>>, vector<1x128xf32>
      tpu.vector_store %arg6[%c0_13, %c0_14], %19 {strides = array<i32>} : memref<1x128xf32, #tpu.memory_space<vmem>>, vector<1x128xf32>,
    } else {
    }
    %c0 = arith.constant 0 : index
    %c0_1 = arith.constant 0 : index
    %3 = vector.load %arg4[%c0, %c0_1] : memref<8x128xf32, #tpu.memory_space<vmem>>, vector<8x128xf32>
    %c0_2 = arith.constant 0 : index
    %c0_3 = arith.constant 0 : index
    %4 = vector.load %arg2[%c0_2, %c0_3] : memref<8x128xf32, #tpu.memory_space<vmem>>, vector<8x128xf32>
    %5 = arith.subf %3, %4 : vector<8x128xf32>
    %c0_4 = arith.constant 0 : index
    %c0_5 = arith.constant 0 : index
    %6 = vector.load %arg3[%c0_4, %c0_5] : memref<8x128xf32, #tpu.memory_space<vmem>>, vector<8x128xf32>
    %7 = arith.subf %3, %6 : vector<8x128xf32>
    %8 = arith.mulf %5, %5 : vector<8x128xf32>
    %9 = arith.mulf %7, %7 : vector<8x128xf32>
    %10 = arith.addf %8, %9 : vector<8x128xf32>
    %c0_6 = arith.constant 0 : index
    %c0_7 = arith.constant 0 : index
    %11 = vector.load %arg6[%c0_6, %c0_7] : memref<1x128xf32, #tpu.memory_space<vmem>>, vector<1x128xf32>
    %cst = arith.constant dense<0.000000e+00> : vector<128xf32>
    %12 = vector.multi_reduction <add>, %10, %cst [0] : vector<8x128xf32> to vector<128xf32>
    %13 = vector.shape_cast %12 : vector<128xf32> to vector<1x128xf32>
    %14 = arith.addf %11, %13 : vector<1x128xf32>
    %c0_8 = arith.constant 0 : index
    %c0_9 = arith.constant 0 : index
    %15 = vector.load %arg6[%c0_8, %c0_9] : memref<1x128xf32, #tpu.memory_space<vmem>>, vector<1x128xf32>
    tpu.vector_store %arg6[%c0_8, %c0_9], %14 {strides = array<i32>} : memref<1x128xf32, #tpu.memory_space<vmem>>, vector<1x128xf32>,
    %c0_i32_10 = arith.constant 0 : i32
    %16 = arith.cmpi eq, %arg1, %c0_i32_10 : i32
    %17 = arith.extui %16 : i1 to i32
    %c0_i32_11 = arith.constant 0 : i32
    %18 = arith.cmpi ne, %17, %c0_i32_11 : i32
    scf.if %18 {
      %c0_12 = arith.constant 0 : index
      %c0_13 = arith.constant 0 : index
      %19 = vector.load %arg6[%c0_12, %c0_13] : memref<1x128xf32, #tpu.memory_space<vmem>>, vector<1x128xf32>
      %c0_14 = arith.constant 0 : index
      %c0_15 = arith.constant 0 : index
      %20 = vector.load %arg5[%c0_14, %c0_15] : memref<1x128xf32, #tpu.memory_space<vmem>>, vector<1x128xf32>
      tpu.vector_store %arg5[%c0_14, %c0_15], %19 {strides = array<i32>} : memref<1x128xf32, #tpu.memory_space<vmem>>, vector<1x128xf32>,
    } else {
    }
    return
  }
  func.func @transform_0(%arg0: i32, %arg1: i32) -> (i32, i32) {
    %c1_i32 = arith.constant 1 : i32
    %0 = arith.muli %arg0, %c1_i32 : i32
    %1 = arith.addi %0, %arg1 : i32
    %c1_i32_0 = arith.constant 1 : i32
    %2 = arith.minsi %1, %c1_i32_0 : i32
    %c0_i32 = arith.constant 0 : i32
    %c0_i32_1 = arith.constant 0 : i32
    return %2, %c0_i32 : i32, i32
  }
  func.func @transform_1(%arg0: i32, %arg1: i32) -> (i32, i32) {
    %c1_i32 = arith.constant 1 : i32
    %0 = arith.muli %arg0, %c1_i32 : i32
    %1 = arith.addi %0, %arg1 : i32
    %c1_i32_0 = arith.constant 1 : i32
    %2 = arith.minsi %1, %c1_i32_0 : i32
    %c0_i32 = arith.constant 0 : i32
    %c0_i32_1 = arith.constant 0 : i32
    return %2, %c0_i32 : i32, i32
  }
  func.func @transform_2(%arg0: i32, %arg1: i32) -> (i32, i32) {
    %c1_i32 = arith.constant 1 : i32
    %0 = arith.muli %arg0, %c1_i32 : i32
    %1 = arith.addi %0, %arg1 : i32
    %c1_i32_0 = arith.constant 1 : i32
    %2 = arith.minsi %1, %c1_i32_0 : i32
    %c0_i32 = arith.constant 0 : i32
    %c0_i32_1 = arith.constant 0 : i32
    return %2, %c0_i32 : i32, i32
  }
  func.func @transform_3(%arg0: i32, %arg1: i32) -> (i32, i32) {
    %c0_i32 = arith.constant 0 : i32
    %c0_i32_0 = arith.constant 0 : i32
    return %c0_i32, %arg0 : i32, i32
  }
}

</mosaic_0001>

<bundles_post_ra>
// kernel: tpu_custom_call.1
= control target key start
LH: loop header
LB: loop body
LE: loop exit
PB: predicated region body
PF: predicated region fallthrough
CT: control target
= control target key end

     0   :  { %s1080_s0 = inlined_call_operand.hbm [shape: f32[16,128], index: 0, kind: input, shape index: {}]   ;;  %s1081_s1 = inlined_call_operand.hbm [shape: f32[16,128], index: 1, kind: input, shape index: {}]   ;;  %s1082_s2 = inlined_call_operand.hbm [shape: f32[16,128], index: 2, kind: input, shape index: {}]   ;;  %s1083_s3 = inlined_call_operand.hbm [shape: f32[1,256], index: 3, kind: output, shape index: {}]  }
   0x1   :  { %1092 = sst [smem:[#allocation18_spill]] %s1081_s1 }
   0x2   :  { %8 = vsyncpa [#allocation4], 0 }
   0x3   :  { %10 = vsyncpa [#allocation4 + $0x1], 0 }
   0x4   :  { %11 = vsyncpa [#allocation7], 0 }
   0x5   :  { %13 = vsyncpa [#allocation7 + $0x1], 0 }
   0x6   :  { %14 = vsyncpa [#allocation5], 0 }
   0x7   :  { %16 = vsyncpa [#allocation5 + $0x1], 0  ;;  %s802_s12 = smov 0   ;;  %s804_s13 = smov 0  }
   0x8   :  { %s806_s14 = smov 0   ;;  %s808_s15 = smov 0  }
   0x9   :  { %s810_s16 = smov 0   ;;  %s812_s17 = smov 0  }
   0xa   :  { %s814_s18 = smov 0   ;;  %s816_s19 = smov 0  }
   0xb   :  { %s818_s20 = smov 0  }
   0xc LB: > { %1093 = sst [smem:[#allocation13_spill]] %s763_s17  ;;  %s846_s21 = sadd.s32 4294967295, %s775_s20   ;;  %s775_s20 = sphi %s818_s20, %s22_s20   ;;  %s771_s19 = sphi %s816_s19, %s1119_s19   ;;  %s767_s18 = sphi %s814_s18, %s1118_s18   ;;  %s763_s17 = sphi %s812_s17, %s1117_s17   ;;  %s759_s16 = sphi %s810_s16, %s1124_s16   ;;  %s755_s15 = sphi %s808_s15, %s1123_s15   ;;  %s751_s14 = sphi %s806_s14, %s1122_s14   ;;  %s747_s13 = sphi %s804_s13, %s1121_s13   ;;  %s743_s12 = sphi %s802_s12, %s1120_s12  }
   0xd   : > { %1094 = sst [smem:[#allocation14_spill]] %s771_s19  ;;  %s462_s22 = sadd.s32 4294967294, %s775_s20  }
   0xe   : > { %s34_s23 = sadd.s32 1, %s771_s19  ;;  %p39_p0 = scmp.lt.s32.totalorder %s771_s19, 1 }
   0xf   : > { %p36_p1 = scmp.ge.s32.totalorder %s34_s23, 2  ;;  %s47_s24 = sadd.s32 1, %s763_s17 }
  0x10   : > { %s40_s25 = scalar_select %p39_p0, %s771_s19, 1 }
  0x11   : > { %s1126_s23 = smov (%p36_p1, %s34_s23), 0  ;;  %p54_p2 = scmp.ne.s32.totalorder %s763_s17, %s759_s16 }
  0x12   : > { %1095 = sst [smem:[#allocation15_spill]] %s1126_s23  ;;  %p55_p3 = scmp.eq.s32.totalorder %s775_s20, 0 }
  0x13   : > { %p42_p4 = scmp.lt.s32.totalorder %s1126_s23, 1  ;;  %p60_p5 = scmp.ne.s32.totalorder %s759_s16, %s755_s15 }
  0x14   : > { %p860_p6 = por %p55_p3, %p54_p2  ;;  %p61_p7 = scmp.eq.s32.totalorder %s846_s21, 0 }
  0x15   : > { %s43_s27 = scalar_select %p42_p4, %s1126_s23, 1 }
  0x16   : > { %p866_p8 = por %p61_p7, %p60_p5  ;;  %s134_s29 = ssub.s32 %s771_s19, %s1126_s23 }
  0x17   : > { %s44_s30 = ssub.s32 %s40_s25, %s43_s27  ;;  %p135_p9 = scmp.eq.s32.totalorder %s134_s29, 0 }
  0x18   : > { %s1097_s28 = scalar_select %p866_p8, 1, 0 }
  0x19   : > { %p45_p10 = scmp.eq.s32.totalorder %s44_s30, 0  ;;  %s137_s4 = sadd.s32 1, %s751_s14 }
  0x1a   : > { %s874_s5 = scalar_select %p135_p9, %s751_s14, %s137_s4  }
  0x1b   : > { %s877_s6 = scalar_select %p45_p10, %s763_s17, %s47_s24  }
  0x1c   : > { %1098 = sst [smem:[#allocation16_spill]] %s874_s5  ;;  %p147_p11 = scmp.ne.s32.totalorder %s751_s14, %s747_s13 }
  0x1d   : > { %1099 = sst [smem:[#allocation17_spill]] %s877_s6  ;;  %p148_p12 = scmp.eq.s32.totalorder %s846_s21, 1 }
  0x1e   : > { %p153_p13 = scmp.ne.s32.totalorder %s747_s13, %s743_s12  ;;  %p154_p0 = scmp.eq.s32.totalorder %s462_s22, 1 }
  0x1f   : > { %p884_p1 = por %p148_p12, %p147_p11  ;;  %p500_p4 = scmp.lt.s32.totalorder %s775_s20, 2 }
  0x20   : > { %p889_p3 = por %p154_p0, %p153_p13  ;;  %s1084_s9 = sand.u32 1, %s763_s17  }
  0x21   : > { %s1100_s7 = scalar_select %p884_p1, 1, 0 }
  0x22   : > { %s1101_s8 = scalar_select %p889_p3, 1, 0 }
  0x23   : > { %s895_s10 = sshll.u32 %s40_s25, 7  ;;  %s899_s11 = sshll.u32 %s1084_s9, 3 }
  0x24   : > { %p903_p5 = pnand %p500_p4, %p860_p6  ;;  %s195_s22 = sand.u32 1, %s775_s20  }
  0x25   : > { %s1103_s1 = sld [smem:[#allocation18_spill]]  ;;  %s199_s25 = scalar_lea.vmem [#allocation6], %s899_s11 }
  0x26   : > { %s1102_s15 = scalar_select %p903_p5, 1, 0 }
  0x27   : > { %s209_s30 = sshll.u32 %s199_s25, 4  ;;  %s918_s26 = scalar_lea.sflag [#allocation7], %s195_s22  ;;  %s915_s30 = int_to_ptr.vmem [resolvable:$true] %s209_s30 }
  0x28   : > { %p924_p9 = pneg %p903_p5 }
  0x2b   : > { %s912_s29 = scalar_lea.hbm %s1103_s1, %s895_s10  ;;  %s580_s25 = scalar_lea.hbm %s1103_s1, 256 }
  0x2c   : > { %s575_s4 = scalar_lea.hbm %s912_s29, 128  ;;  %p581_p12 = scmp.lt.u32.totalorder %s912_s29, %s1103_s1 }
  0x2d   : > { %p576_p6 = scmp.ne.s32.totalorder %s912_s29, %s575_s4  ;;  %p582_p13 = scmp.lt.u32.totalorder %s580_s25, %s575_s4 }
  0x2e   : > { %p584_p4 = scmp.lt.u32.totalorder %s575_s4, %s912_s29 }
  0x2f   : > { %p578_p10 = pnand %p924_p9, %p576_p6  ;;  %p583_p0 = por %p582_p13, %p581_p12 }
  0x31   : > { %p579_p11 = pneg %p578_p10  ;;  %p585_p2 = por %p584_p4, %p583_p0 }
  0x33   : > { %p586_p7 = pnand %p585_p2, %p579_p11 }
  0x35   : > { %589 = shalt.err (!%p586_p7)
}
  0x36   : > { %s590_s22 = scalar_lea.vmem %s915_s30, 128  ;;  %s777_s24 = smov [#allocation6]  }
  0x37   : > { %p591_p6 = scmp.ne.s32.totalorder %s915_s30, %s590_s22  ;;  %s595_s27 = sshll.u32 %s777_s24, 4  ;;  %s596_s27 = int_to_ptr.vmem [resolvable:$false] %s595_s27 }
  0x38   : > { %s597_s19 = scalar_lea.vmem %s596_s27, 256  ;;  %p598_p1 = scmp.lt.s32.totalorder %s915_s30, %s596_s27 }
  0x39   : > { %p593_p10 = pnand %p591_p6, %p924_p9  ;;  %p599_p8 = scmp.lt.s32.totalorder %s597_s19, %s590_s22 }
  0x3b   : > { %p594_p3 = pneg %p593_p10  ;;  %p600_p12 = por %p599_p8, %p598_p1 }
  0x3d   : > { %p601_p13 = pnand %p600_p12, %p594_p3 }
  0x3f   : > { %604 = shalt.err (!%p601_p13)
}
  0x40   : > { %492 = dma.hbm_to_vmem [thread:$0]  (!%p903_p5), %s912_s29, 128, %s915_s30, %s918_s26  }
  0x41   : > { %p235_p2 = scmp.lt.s32.totalorder %s775_s20, 3  ;;  %p1105_p7 = scmp.ge.s32.totalorder %s775_s20, 1 }
  0x42   : > { %s959_s22 = scalar_lea.hbm %s1080_s0, %s895_s10  ;;  %s178_s24 = scalar_lea.vmem [#allocation3], %s899_s11 }
  0x43   : > { %p951_p11 = pnand %p1105_p7, %p235_p2  ;;  %s188_s27 = sshll.u32 %s178_s24, 4  ;;  %s189_s27 = int_to_ptr.vmem [resolvable:$true] %s188_s27 }
  0x44   : > { %s1107_s19 = sand.u32 1, %s763_s17   ;;  %s605_s30 = scalar_lea.hbm %s959_s22, 128 }
  0x45   : > { %s1106_s23 = scalar_select %p951_p11, 1, 0 }
  0x46   : > { %s175_s29 = scalar_lea.sflag [#allocation4], %s1107_s19  ;;  %p606_p8 = scmp.ne.s32.totalorder %s959_s22, %s605_s30 }
  0x47   : > { %s610_s4 = scalar_lea.hbm %s1080_s0, 256  ;;  %p611_p0 = scmp.lt.u32.totalorder %s959_s22, %s1080_s0 }
  0x48   : > { %p608_p1 = pnand %p606_p8, %p924_p9  ;;  %p612_p4 = scmp.lt.u32.totalorder %s610_s4, %s605_s30 }
  0x49   : > { %p614_p10 = scmp.lt.u32.totalorder %s605_s30, %s959_s22 }
  0x4a   : > { %p609_p3 = pneg %p608_p1  ;;  %p613_p6 = por %p612_p4, %p611_p0 }
  0x4c   : > { %p615_p12 = por %p614_p10, %p613_p6 }
  0x4e   : > { %p616_p13 = pnand %p615_p12, %p609_p3 }
  0x50   : > { %619 = shalt.err (!%p616_p13)
}
  0x51   : > { %s620_s24 = scalar_lea.vmem %s189_s27, 128  ;;  %s778_s19 = smov [#allocation3]  }
  0x52   : > { %p621_p2 = scmp.ne.s32.totalorder %s189_s27, %s620_s24  ;;  %s625_s17 = sshll.u32 %s778_s19, 4  ;;  %s626_s17 = int_to_ptr.vmem [resolvable:$false] %s625_s17 }
  0x53   : > { %s627_s1 = scalar_lea.vmem %s626_s17, 256  ;;  %p628_p1 = scmp.lt.s32.totalorder %s189_s27, %s626_s17 }
  0x54   : > { %p623_p7 = pnand %p621_p2, %p924_p9  ;;  %p629_p11 = scmp.lt.s32.totalorder %s627_s1, %s620_s24 }
  0x56   : > { %p624_p8 = pneg %p623_p7  ;;  %p630_p5 = por %p629_p11, %p628_p1 }
  0x58   : > { %p631_p0 = pnand %p630_p5, %p624_p8 }
  0x5a   : > { %634 = shalt.err (!%p631_p0)
}
  0x5b   : > { %p1108_p4 = scmp.ne.s32.totalorder %s1102_s15, 0  ;;  %s985_s30 = scalar_lea.hbm %s1082_s2, %s895_s10 }
  0x5c   : > { %s220_s17 = scalar_lea.vmem [#allocation8], %s899_s11  ;;  %s635_s25 = scalar_lea.hbm %s985_s30, 128 }
  0x5d   : > { %489 = dma.hbm_to_vmem [thread:$0]  (!%p1108_p4), %s959_s22, 128, %s189_s27, %s175_s29  }
  0x5e   : > { %s230_s4 = sshll.u32 %s220_s17, 4  ;;  %p636_p5 = scmp.ne.s32.totalorder %s985_s30, %s635_s25  ;;  %s231_s4 = int_to_ptr.vmem [resolvable:$true] %s230_s4 }
  0x5f   : > { %s640_s22 = scalar_lea.hbm %s1082_s2, 256  ;;  %p641_p6 = scmp.lt.u32.totalorder %s985_s30, %s1082_s2 }
  0x60   : > { %p638_p11 = pnand %p636_p5, %p924_p9  ;;  %p642_p10 = scmp.lt.u32.totalorder %s640_s22, %s635_s25 }
  0x61   : > { %p644_p13 = scmp.lt.u32.totalorder %s635_s25, %s985_s30 }
  0x62   : > { %p639_p3 = pneg %p638_p11  ;;  %p643_p12 = por %p642_p10, %p641_p6 }
  0x64   : > { %p645_p2 = por %p644_p13, %p643_p12 }
  0x66   : > { %p646_p7 = pnand %p645_p2, %p639_p3 }
  0x68   : > { %649 = shalt.err (!%p646_p7)
}
  0x69   : > { %s650_s10 = scalar_lea.vmem %s231_s4, 128  ;;  %s779_s11 = smov [#allocation8]  }
  0x6a   : > { %p651_p8 = scmp.ne.s32.totalorder %s231_s4, %s650_s10  ;;  %s655_s1 = sshll.u32 %s779_s11, 4  ;;  %s656_s1 = int_to_ptr.vmem [resolvable:$false] %s655_s1 }
  0x6b   : > { %s657_s5 = scalar_lea.vmem %s656_s1, 256  ;;  %p658_p5 = scmp.lt.s32.totalorder %s231_s4, %s656_s1 }
  0x6c   : > { %p653_p1 = pnand %p651_p8, %p924_p9  ;;  %p659_p11 = scmp.lt.s32.totalorder %s657_s5, %s650_s10 }
  0x6e   : > { %p654_p0 = pneg %p653_p1  ;;  %p660_p4 = por %p659_p11, %p658_p5 }
  0x70   : > { %p661_p6 = pnand %p660_p4, %p654_p0 }
  0x72   : > { %664 = shalt.err (!%p661_p6)
}
  0x73   : > { %p1109_p10 = scmp.ne.s32.totalorder %s1102_s15, 0  ;;  %p1110_p3 = scmp.ne.s32.totalorder %s1106_s23, 0 }
  0x74   : > { %s241_s9 = sand.u32 (!%p1110_p3), 1, %s759_s16   ;;  %p1111_p9 = scmp.ne.s32.totalorder (!%p1110_p3), %s1097_s28, 0 }
  0x75   : > { %495 = dma.hbm_to_vmem [thread:$0]  (!%p1109_p10), %s985_s30, 128, %s231_s4, %s918_s26  }
  0x76   : > { %239 = sbr.rel (%p1110_p3) target bundleno = 173 (0xad), region = 32  ;;  %s472_s6 = sshll.u32 (!%p1110_p3), %s241_s9, 3 }
  0x77   : > { %s242_s17 = scalar_lea.sflag (!%p1110_p3), [#allocation4], %s241_s9  ;;  %s245_s25 = scalar_lea.vmem (!%p1110_p3), [#allocation3], %s472_s6 }
  0x7d   : > { %730 = dma.done.wait (%p1111_p9), %s242_s17, 128  }
  0x7e   : > { %732 = vsyncadd (%p1111_p9), %s242_s17, 4294967168  ;;  %s250_s15 = sand.u32 1, %s846_s21   ;;  %s254_s19 = scalar_lea.vmem [#allocation6], %s472_s6 }
  0x7f   : > { %s251_s24 = scalar_lea.sflag [#allocation7], %s250_s15 }
  0x80   : > { %734 = dma.done.wait (%p1111_p9), %s251_s24, 256  }
  0x81   : > { %736 = vsyncadd (%p1111_p9), %s251_s24, 4294967040  ;;  %v780_v0 = vmov 0.0   ;;  %s263_s26 = scalar_lea.vmem [#allocation8], %s472_s6  ;;  %v310_v2 = vld [vmem:[%s245_s25] sm:$0xff]  ;;  %v312_v3 = vld [vmem:[%s254_s19] sm:$0xff]  ;;  %s293_s21 = sand.u32 1, %s747_s13  }
  0x82   : > { %308 = vst [vmem:[#allocation2] sm:$0x1] %v780_v0  ;;  %v309_v1 = vld [vmem:[%s263_s26] sm:$0xff]  ;;  %s294_s28 = scalar_lea.vmem [#allocation9], %s293_s21  ;;  %s475_s30 = sshll.u32 %s767_s18, 4 }
  0x83   : > { %v311_v4 = vsub.f32 %v309_v1, %v310_v2  ;;  %v313_v5 = vsub.f32 %v309_v1, %v312_v3  ;;  %s344_s23 = sshll.u32 %s294_s28, 4  ;;  %s1025_s27 = scalar_lea.hbm %s1083_s3, %s475_s30  ;;  %s1020_s23 = int_to_ptr.vmem [resolvable:$true] %s344_s23 }
  0x84   : > { %s332_s29 = scalar_lea.sflag [#allocation5], %s293_s21  ;;  %s665_s10 = scalar_lea.vmem %s1020_s23, 16 }
  0x85   : > { %v314_v6 = vmul.f32 %v311_v4, %v311_v4  ;;  %v315_v7 = vmul.f32 %v313_v5, %v313_v5  ;;  %p666_p4 = scmp.ne.s32.totalorder %s1020_s23, %s665_s10  ;;  %p1112_p12 = scmp.ne.s32.totalorder %s1100_s7, 0 }
  0x86   : > { %s781_s11 = smov [#allocation9]  }
  0x87   : > { %v316_v8 = vadd.f32 %v315_v7, %v314_v6  ;;  %p667_p13 = pnand %p666_p4, %p1112_p12  ;;  %s669_s18 = sshll.u32 %s781_s11, 4  ;;  %s670_s18 = int_to_ptr.vmem [resolvable:$false] %s669_s18 }
  0x88   : > { %s671_s1 = scalar_lea.vmem %s670_s18, 32  ;;  %p672_p7 = scmp.lt.s32.totalorder %s1020_s23, %s670_s18 }
  0x89   : > { %v318_v9 = vrot.slane %v316_v8, 4  ;;  %v317_v14 = vld [vmem:[#allocation2] sm:$0x1]  ;;  %p668_p2 = pneg %p667_p13  ;;  %p673_p8 = scmp.lt.s32.totalorder %s671_s1, %s665_s10 }
  0x8b   : > { %v319_v10 = vadd.f32 %v318_v9, %v316_v8  ;;  %p674_p1 = por %p673_p8, %p672_p7 }
  0x8d   : > { %v320_v11 = vrot.slane %v319_v10, 2  ;;  %p675_p0 = pnand %p674_p1, %p668_p2 }
  0x8f   : > { %v321_v12 = vadd.f32 %v320_v11, %v319_v10 }
  0x91   : > { %v322_v13 = vrot.slane %v321_v12, 1 }
  0x93   : > { %v323_v15 = vadd.f32 %v322_v13, %v321_v12 }
  0x95   : > { %v324_v16 = vadd.f32 %v323_v15, %v317_v14 }
  0x97   : > { %325 = vst [vmem:[#allocation2] sm:$0x1] %v324_v16 }
  0x9e   : > { %v329_v17 = vld [vmem:[#allocation2] sm:$0x1] }
  0x9f   : > { %330 = vst [vmem:[%s294_s28] sm:$0x1] %v329_v17 }
  0xa0   : > { %678 = shalt.err (!%p675_p0)
}
  0xa1   : > { %s679_s5 = scalar_lea.hbm %s1025_s27, 16  ;;  %s683_s17 = scalar_lea.hbm %s1083_s3, 32 }
  0xa2   : > { %p680_p5 = scmp.ne.s32.totalorder %s1025_s27, %s679_s5  ;;  %p684_p10 = scmp.lt.u32.totalorder %s1025_s27, %s1083_s3 }
  0xa3   : > { %p685_p3 = scmp.lt.u32.totalorder %s683_s17, %s679_s5  ;;  %p687_p4 = scmp.lt.u32.totalorder %s679_s5, %s1025_s27 }
  0xa4   : > { %p681_p11 = pnand %p680_p5, %p1112_p12 }
  0xa5   : > { %p686_p9 = por %p685_p3, %p684_p10 }
  0xa6   : > { %p682_p6 = pneg %p681_p11 }
  0xa7   : > { %p688_p13 = por %p687_p4, %p686_p9 }
  0xa9   : > { %p689_p2 = pnand %p688_p13, %p682_p6 }
  0xab   : > { %692 = shalt.err (!%p689_p2)
}
  0xac   : > { %484 = dma.vmem_to_hbm [thread:$0]  (%p1112_p12), %s1020_s23, 16, %s1025_s27, %s332_s29  }
  0xad PF: > { %s356_s24 = sand.u32 1, %s743_s12   ;;  %p1113_p7 = scmp.ne.s32.totalorder %s1101_s8, 0 }
  0xae   : > { %p1114_p8 = scmp.ge.s32.totalorder %s775_s20, 2  ;;  %s357_s19 = scalar_lea.sflag [#allocation5], %s356_s24 }
  0xb0   : > { %p497_p1 = pnand %p1114_p8, %p1113_p7 }
  0xb2   : > { %738 = dma.done.wait (!%p497_p1), %s357_s19, 16  }
  0xb3   : > { %740 = vsyncadd (!%p497_p1), %s357_s19, 4294967280  ;;  %s22_s20 = sadd.s32 1, %s775_s20   ;;  %s1115_s7 = sld [smem:[#allocation16_spill]] }
  0xb4   : > { %p19_p0 = scmp.ge.s32.totalorder %s22_s20, 4   ;;  %s1116_s26 = sld [smem:[#allocation13_spill]] }
  0xb5   : > { %s1117_s17 = sld [smem:[#allocation17_spill]]  ;;  %s1118_s18 = sld [smem:[#allocation14_spill]] }
  0xb6   : > { %s1119_s19 = sld [smem:[#allocation15_spill]]  ;;  %s1120_s12 = smov %s747_s13 }
  0xb7   : > { %s1121_s13 = smov %s751_s14  ;;  %s1123_s15 = smov %s759_s16 }
  0xb8   :  { %21 = sbr.rel (!%p19_p0) target bundleno = 12 (0xc), region = 109 }
  0xb9   : > { %s1122_s14 = smov %s1115_s7 }
  0xba   : > { %s1124_s16 = smov %s1116_s26 }
  0xbf   :  { %361 = vsyncpa [#allocation4], 1 }
  0xc0   :  { %363 = vsyncpa [#allocation4 + $0x1], 1 }
  0xc1   :  { %364 = vsyncpa [#allocation7], 1 }
  0xc2   :  { %366 = vsyncpa [#allocation7 + $0x1], 1 }
  0xc3   :  { %367 = vsyncpa [#allocation5], 1 }
  0xc4   :  { %369 = vsyncpa [#allocation5 + $0x1], 1 }

</bundles_post_ra>
